<compile_context>
chip_gen: v7x
topology: tpu7x:2x2x1
jax: 0.10.0
libtpu: 0.0.40
codegen_flags: <defaults>
</compile_context>

<pallas_src>
import functools

import numpy as np
import jax
import jax.numpy as jnp
from jax import lax
from jax.experimental import pallas as pl
from jax.experimental.pallas import tpu as pltpu


# ----------------------------------------------------------------------------
# Bicubic interpolation matrices (PyTorch semantics: align_corners=True, A=-0.75,
# out-of-range taps clamped to the border).
# ----------------------------------------------------------------------------
def _bicubic_matrix(in_size, out_size, A=-0.75):
    if in_size == 1:
        return np.ones((out_size, 1), dtype=np.float32)

    def cubic(t):
        at = abs(float(t))
        if at <= 1.0:
            return (A + 2.0) * at ** 3 - (A + 3.0) * at ** 2 + 1.0
        if at < 2.0:
            return A * at ** 3 - 5.0 * A * at ** 2 + 8.0 * A * at - 4.0 * A
        return 0.0

    Wm = np.zeros((out_size, in_size), dtype=np.float32)
    scale = (in_size - 1) / (out_size - 1)
    for i in range(out_size):
        x = i * scale
        x0 = int(np.floor(x))
        t = x - x0
        for off in (-1, 0, 1, 2):
            w = cubic(t - off)
            idx = min(max(x0 + off, 0), in_size - 1)  # border replicate
            Wm[i, idx] += w
    return Wm


# ----------------------------------------------------------------------------
# Kernel 1: separable bicubic resize  (out = Wh @ x @ Ww^T), one (n, c) per step.
# ----------------------------------------------------------------------------
def _resize_kernel(wh_ref, wwt_ref, x_ref, o_ref):
    x = x_ref[...].astype(jnp.float32)
    tmp = jnp.dot(wh_ref[...], x, preferred_element_type=jnp.float32)
    o_ref[...] = jnp.dot(tmp, wwt_ref[...],
                         preferred_element_type=jnp.float32).astype(o_ref.dtype)


def bicubic_resize(x, out_hw):
    N, C, H, W = x.shape
    out_h, out_w = out_hw
    wh = jnp.asarray(_bicubic_matrix(H, out_h))        # (out_h, H)
    wwt = jnp.asarray(_bicubic_matrix(W, out_w).T)     # (W, out_w)
    x2 = x.reshape(N * C, H, W)

    out = pl.pallas_call(
        _resize_kernel,
        out_shape=jax.ShapeDtypeStruct((N * C, out_h, out_w), jnp.float32),
        grid=(N * C,),
        in_specs=[
            pl.BlockSpec((out_h, H), lambda i: (0, 0)),
            pl.BlockSpec((W, out_w), lambda i: (0, 0)),
            pl.BlockSpec((None, H, W), lambda i: (i, 0, 0)),
        ],
        out_specs=pl.BlockSpec((None, out_h, out_w), lambda i: (i, 0, 0)),
        compiler_params=pltpu.CompilerParams(dimension_semantics=("parallel",)),
    )(wh, wwt, x2)
    return out.reshape(N, C, out_h, out_w)


# ----------------------------------------------------------------------------
# Kernel 2: (M, K) @ (K, NC) + bias [+ residual] [-> PReLU], tiled over columns.
# Used for Conv2d (with fused "+ f1" residual) and Conv3d+PReLU layers via im2col.
# ----------------------------------------------------------------------------
def _mm_kernel(*refs, has_res, prelu_alpha):
    w_ref, x_ref, b_ref = refs[0], refs[1], refs[2]
    r_ref = refs[3] if has_res else None
    o_ref = refs[-1]
    y = jnp.dot(w_ref[...], x_ref[...], preferred_element_type=jnp.float32)
    y = y + b_ref[...]
    if has_res:
        y = y + r_ref[...].astype(jnp.float32)
    if prelu_alpha is not None:
        y = jnp.where(y >= 0.0, y, prelu_alpha * y)
    o_ref[...] = y.astype(o_ref.dtype)


def matmul_cols(w, x, b, *, residual=None, prelu_alpha=None, tile_n=2048):
    M, K = w.shape
    assert x.shape[0] == K
    NC = x.shape[1]

    tile = int(min(tile_n, ((NC + 127) // 128) * 128))
    NC_pad = pl.cdiv(NC, tile) * tile
    if NC_pad != NC:
        x = jnp.pad(x, ((0, 0), (0, NC_pad - NC)))
        if residual is not None:
            residual = jnp.pad(residual, ((0, 0), (0, NC_pad - NC)))

    in_specs = [
        pl.BlockSpec((M, K), lambda j: (0, 0)),
        pl.BlockSpec((K, tile), lambda j: (0, j)),
        pl.BlockSpec((M, 1), lambda j: (0, 0)),
    ]
    args = [w, x, b.reshape(M, 1)]
    if residual is not None:
        in_specs.append(pl.BlockSpec((M, tile), lambda j: (0, j)))
        args.append(residual)

    kernel = functools.partial(_mm_kernel, has_res=residual is not None,
                               prelu_alpha=prelu_alpha)
    out = pl.pallas_call(
        kernel,
        out_shape=jax.ShapeDtypeStruct((M, NC_pad), jnp.float32),
        grid=(NC_pad // tile,),
        in_specs=in_specs,
        out_specs=pl.BlockSpec((M, tile), lambda j: (0, j)),
        compiler_params=pltpu.CompilerParams(dimension_semantics=("parallel",)),
    )(*args)
    return out[:, :NC] if NC_pad != NC else out


# ----------------------------------------------------------------------------
# im2col helpers (layout-only, done in the XLA wrapper).
# ----------------------------------------------------------------------------
def _im2col_2d(x):
    # (N, C, H, W) -> (C*9, N*H*W), row index = ci*9 + kh*3 + kw
    N, C, H, W = x.shape
    xp = jnp.pad(x, ((0, 0), (0, 0), (1, 1), (1, 1)))
    slabs = [xp[:, :, kh:kh + H, kw:kw + W] for kh in range(3) for kw in range(3)]
    pat = jnp.stack(slabs, axis=2)                       # (N, C, 9, H, W)
    return pat.transpose(1, 2, 0, 3, 4).reshape(C * 9, N * H * W)


def _im2col_3d(x):
    # (N, C, D, H, W) -> (C*27, N*D*H*W), row index = ci*27 + kd*9 + kh*3 + kw
    N, C, D, H, W = x.shape
    xp = jnp.pad(x, ((0, 0), (0, 0), (1, 1), (1, 1), (1, 1)))
    slabs = [xp[:, :, kd:kd + D, kh:kh + H, kw:kw + W]
             for kd in range(3) for kh in range(3) for kw in range(3)]
    pat = jnp.stack(slabs, axis=2)                       # (N, C, 27, D, H, W)
    return pat.transpose(1, 2, 0, 3, 4, 5).reshape(C * 27, N * D * H * W)


# ----------------------------------------------------------------------------
# Parameters (PyTorch-style uniform init; PReLU alpha = 0.25 default).
# ----------------------------------------------------------------------------
def init_params(key):
    ks = jax.random.split(key, 8)

    def u(k, shape, fan_in):
        bound = 1.0 / np.sqrt(fan_in)
        return jax.random.uniform(k, shape, jnp.float32, -bound, bound)

    p = {
        "conv_w": u(ks[0], (3, 6, 3, 3), 6 * 9),
        "conv_b": u(ks[1], (3,), 6 * 9),
    }
    for i in range(3):
        p[f"sm{i}_w"] = u(ks[2 + 2 * i], (12, 12, 3, 3, 3), 12 * 27)
        p[f"sm{i}_b"] = u(ks[3 + 2 * i], (12,), 12 * 27)
        p[f"sm{i}_a"] = 0.25  # nn.PReLU() default; compile-time constant in the kernel
    return p


# ----------------------------------------------------------------------------
# Derivative.forward (Pallas) and a pure-JAX reference using the same stand-ins.
# ----------------------------------------------------------------------------
def derivative_forward(params, img):
    N = img.shape[0]
    img_x = bicubic_resize(img.astype(jnp.float32), (256, 256))     # (N, 3, 256, 256)

    # TODO(synk): u_local UNet not defined in the spec -> identity stand-in.
    f1 = img_x
    f2 = jnp.concatenate([img_x, f1], axis=1)                       # (N, 6, 256, 256)

    # f3 = conv2d(f2); out = u_g(f3) + f1  (u_g identity; "+ f1" fused into the kernel)
    pat2 = _im2col_2d(f2)                                           # (54, N*65536)
    res = f1.transpose(1, 0, 2, 3).reshape(3, -1)                   # (3,  N*65536)
    y = matmul_cols(params["conv_w"].reshape(3, 54), pat2, params["conv_b"],
                    residual=res)
    out = y.reshape(3, N, 256, 256).transpose(1, 0, 2, 3)

    out = out.reshape(N, 12, 64, 16, 16)                            # .view(-1,12,64,16,16)

    # smooth: 3 x [Conv3d(12->12, k3, p1) + PReLU]
    for i in range(3):
        pat3 = _im2col_3d(out)                                      # (324, N*16384)
        y = matmul_cols(params[f"sm{i}_w"].reshape(12, 324), pat3,
                        params[f"sm{i}_b"], prelu_alpha=params[f"sm{i}_a"])
        out = y.reshape(12, N, 64, 16, 16).transpose(1, 0, 2, 3, 4)
    return out


def derivative_forward_ref(params, img):
    N, _, H, W = img.shape
    wh = jnp.asarray(_bicubic_matrix(H, 256))
    ww = jnp.asarray(_bicubic_matrix(W, 256))
    x = img.astype(jnp.float32)
    img_x = jnp.einsum("oh,nchw,pw->ncop", wh, x, ww)
    f1 = img_x
    f2 = jnp.concatenate([img_x, f1], axis=1)
    f3 = lax.conv_general_dilated(f2, params["conv_w"], (1, 1), ((1, 1), (1, 1)),
                                  dimension_numbers=("NCHW", "OIHW", "NCHW"))
    f3 = f3 + params["conv_b"].reshape(1, 3, 1, 1)
    out = (f3 + f1).reshape(N, 12, 64, 16, 16)
    for i in range(3):
        out = lax.conv_general_dilated(out, params[f"sm{i}_w"], (1, 1, 1),
                                       ((1, 1), (1, 1), (1, 1)),
                                       dimension_numbers=("NCDHW", "OIDHW", "NCDHW"))
        out = out + params[f"sm{i}_b"].reshape(1, 12, 1, 1, 1)
        a = params[f"sm{i}_a"]
        out = jnp.where(out >= 0, out, a * out)
    return out


if __name__ == "__main__":
    key = jax.random.PRNGKey(0)
    kp, kx = jax.random.split(key)
    params = init_params(kp)
    img = jax.random.normal(kx, (2, 3, 16, 16), dtype=jnp.float32)

    out = derivative_forward(params, img)
    out = jax.block_until_ready(out)
    assert out.shape == (2, 12, 64, 16, 16), out.shape

    ref = derivative_forward_ref(params, img)
    ref = jax.block_until_ready(ref)
    err = float(jnp.max(jnp.abs(out - ref)))
    assert jnp.allclose(out, ref, atol=2e-3, rtol=2e-3), f"max abs err = {err}"

    print("KERNEL_OK")
</pallas_src>

<mosaic_0001>
module attributes {stable_mosaic.version = 11 : i64} {
  func.func @_resize_kernel(%arg0: i32, %arg1: memref<256x16xf32, #tpu.memory_space<vmem>>, %arg2: memref<16x256xf32, #tpu.memory_space<vmem>>, %arg3: memref<1x16x16xf32, #tpu.memory_space<vmem>>, %arg4: memref<1x256x256xf32, #tpu.memory_space<vmem>>) attributes {dimension_semantics = [#tpu.dimension_semantics<parallel>], iteration_bounds = array<i64: 6>, scalar_prefetch = 0 : i64, scratch_operands = 0 : i64, tpu.core_type = #tpu.core_type<tc>, window_params = [{pipeline_mode = #tpu.pipeline_mode<synchronous>, transform_indices = @transform_0, window_bounds = array<i64: 256, 16>}, {pipeline_mode = #tpu.pipeline_mode<synchronous>, transform_indices = @transform_1, window_bounds = array<i64: 16, 256>}, {transform_indices = @transform_2, window_bounds = array<i64: 1, 16, 16>}, {transform_indices = @transform_3, window_bounds = array<i64: 1, 256, 256>}]} {
    %c0 = arith.constant 0 : index
    %c0_0 = arith.constant 0 : index
    %c0_1 = arith.constant 0 : index
    %0 = vector.load %arg3[%c0, %c0_0, %c0_1] : memref<1x16x16xf32, #tpu.memory_space<vmem>>, vector<1x16x16xf32>
    %1 = vector.shape_cast %0 : vector<1x16x16xf32> to vector<16x16xf32>
    %c0_2 = arith.constant 0 : index
    %c0_3 = arith.constant 0 : index
    %2 = vector.load %arg1[%c0_2, %c0_3] : memref<256x16xf32, #tpu.memory_space<vmem>>, vector<256x16xf32>
    %cst = arith.constant dense<0.000000e+00> : vector<256x16xf32>
    %3 = tpu.matmul %2, %1, %cst {dimension_numbers = #tpu.dot_dimension_numbers<[1], [0], [0], [1], [0, 0, 1, 1], [], []>} : vector<256x16xf32>, vector<16x16xf32>, vector<256x16xf32> -> vector<256x16xf32>
    %c0_4 = arith.constant 0 : index
    %c0_5 = arith.constant 0 : index
    %4 = vector.load %arg2[%c0_4, %c0_5] : memref<16x256xf32, #tpu.memory_space<vmem>>, vector<16x256xf32>
    %cst_6 = arith.constant dense<0.000000e+00> : vector<256x256xf32>
    %5 = tpu.matmul %3, %4, %cst_6 {dimension_numbers = #tpu.dot_dimension_numbers<[1], [0], [0], [1], [0, 0, 1, 1], [], []>} : vector<256x16xf32>, vector<16x256xf32>, vector<256x256xf32> -> vector<256x256xf32>
    %c0_7 = arith.constant 0 : index
    %c0_8 = arith.constant 0 : index
    %c0_9 = arith.constant 0 : index
    %6 = vector.load %arg4[%c0_7, %c0_8, %c0_9] : memref<1x256x256xf32, #tpu.memory_space<vmem>>, vector<1x256x256xf32>
    %7 = vector.shape_cast %6 : vector<1x256x256xf32> to vector<256x256xf32>
    %8 = vector.shape_cast %5 : vector<256x256xf32> to vector<1x256x256xf32>
    tpu.vector_store %arg4[%c0_7, %c0_8, %c0_9], %8 {strides = array<i32>} : memref<1x256x256xf32, #tpu.memory_space<vmem>>, vector<1x256x256xf32>,
    return
  }
  func.func @transform_0(%arg0: i32) -> (i32, i32) {
    %c0_i32 = arith.constant 0 : i32
    %c0_i32_0 = arith.constant 0 : i32
    %c0_i32_1 = arith.constant 0 : i32
    return %c0_i32, %c0_i32_0 : i32, i32
  }
  func.func @transform_1(%arg0: i32) -> (i32, i32) {
    %c0_i32 = arith.constant 0 : i32
    %c0_i32_0 = arith.constant 0 : i32
    %c0_i32_1 = arith.constant 0 : i32
    return %c0_i32, %c0_i32_0 : i32, i32
  }
  func.func @transform_2(%arg0: i32) -> (i32, i32, i32) {
    %c0_i32 = arith.constant 0 : i32
    %c0_i32_0 = arith.constant 0 : i32
    %c0_i32_1 = arith.constant 0 : i32
    return %arg0, %c0_i32, %c0_i32_0 : i32, i32, i32
  }
  func.func @transform_3(%arg0: i32) -> (i32, i32, i32) {
    %c0_i32 = arith.constant 0 : i32
    %c0_i32_0 = arith.constant 0 : i32
    %c0_i32_1 = arith.constant 0 : i32
    return %arg0, %c0_i32, %c0_i32_0 : i32, i32, i32
  }
}

</mosaic_0001>

<bundles_post_ra>
// kernel: tpu_custom_call.1
= control target key start
LH: loop header
LB: loop body
LE: loop exit
PB: predicated region body
PF: predicated region fallthrough
CT: control target
= control target key end

     0   :  { %8 = vsyncpa [#allocation3], 0  ;;  %s1934_s0 = inlined_call_operand.vmem [shape: f32[256,16], index: 0, kind: input, shape index: {}]   ;;  %s1935_s1 = inlined_call_operand.hbm [shape: f32[16,256], index: 1, kind: input, shape index: {}]   ;;  %s1936_s2 = inlined_call_operand.hbm [shape: f32[6,16,16], index: 2, kind: input, shape index: {}]   ;;  %s1937_s3 = inlined_call_operand.hbm [shape: f32[6,256,256], index: 3, kind: output, shape index: {}]  }
   0x1   :  { %9 = vsyncpa [#allocation6], 0 }
   0x2   :  { %11 = vsyncpa [#allocation6 + $0x1], 0 }
   0x3   :  { %12 = vsyncpa [#allocation4], 0 }
   0x4   :  { %14 = vsyncpa [#allocation4 + $0x1], 0  ;;  %s1482_s12 = smov 0   ;;  %s1484_s13 = smov 0  }
   0x5   :  { %s1486_s14 = smov 0   ;;  %s1488_s15 = smov 0  }
   0x6 LB: > { %s1503_s16 = sadd.s32 4294967295, %s1450_s15   ;;  %s1080_s17 = sadd.s32 4294967294, %s1450_s15   ;;  %s1450_s15 = sphi %s1488_s15, %s1956_s15   ;;  %s1446_s14 = sphi %s1486_s14, %s1955_s14   ;;  %s1442_s13 = sphi %s1484_s13, %s1954_s13   ;;  %s1438_s12 = sphi %s1482_s12, %s1953_s12  }
   0x7   : > { %p82_p0 = scmp.ne.s32.totalorder %s1442_s13, %s1438_s12  ;;  %p1938_p1 = scmp.eq.s32.totalorder %s1503_s16, 0 }
   0x8   : > { %p112_p3 = scmp.eq.s32.totalorder %s1080_s17, 5  ;;  %p1081_p5 = scmp.ge.s32.totalorder %s1450_s15, 1 }
   0x9   : > { %p1512_p4 = por %p1938_p1, %p82_p0  ;;  %p119_p7 = scmp.lt.s32.totalorder %s1450_s15, 7 }
   0xa   : > { %p1517_p6 = por %p112_p3, %p82_p0  ;;  %s1452_s21 = smov [#allocation2]  }
   0xb   : > { %s1941_s18 = scalar_select %p1512_p4, 1, 0 }
   0xc   : > { %s1942_s19 = scalar_select %p1517_p6, 1, 0 }
   0xd   : > { %p1522_p8 = pnand %p1081_p5, %p119_p7  ;;  %s134_s22 = sshll.u32 %s1452_s21, 4  ;;  %s135_s22 = int_to_ptr.vmem [resolvable:$true] %s134_s22 }
   0xe   : > { %s1535_s24 = sadd.s32 1, %s1450_s15   ;;  %s69_s25 = sadd.s32 1, %s1446_s14 }
   0xf   : > { %s1943_s20 = scalar_select %p1522_p8, 1, 0 }
  0x10   : > { %p1266_p9 = pneg %p1522_p8  ;;  %s66_s26 = ssub.s32 %s1450_s15, %s1535_s24 }
  0x11   : > { %s1322_s29 = scalar_lea.hbm %s1935_s1, 512 }
  0x12   : > { %p1530_p10 = pnand %p1266_p9, %p1938_p1  ;;  %p1323_p11 = scmp.ne.s32.totalorder %s1935_s1, %s1322_s29 }
  0x13   : > { %p1329_p3 = scmp.lt.u32.totalorder %s1322_s29, %s1935_s1 }
  0x14   : > { %p1324_p12 = pneg %p1530_p10 }
  0x16   : > { %p1325_p13 = pnand %p1324_p12, %p1323_p11 }
  0x18   : > { %p1326_p0 = pneg %p1325_p13 }
  0x1a   : > { %p1331_p5 = pnand %p1329_p3, %p1326_p0 }
  0x1c   : > { %1334 = shalt.err (!%p1331_p5)
}
  0x1d   : > { %s1335_s7 = scalar_lea.vmem %s135_s22, 512  ;;  %p1343_p2 = scmp.lt.s32.totalorder %s135_s22, %s135_s22 }
  0x1e   : > { %p1336_p7 = scmp.ne.s32.totalorder %s135_s22, %s1335_s7  ;;  %p1344_p6 = scmp.lt.s32.totalorder %s1335_s7, %s1335_s7 }
  0x20   : > { %p1338_p9 = pnand %p1336_p7, %p1324_p12  ;;  %p1345_p4 = por %p1344_p6, %p1343_p2 }
  0x22   : > { %p1339_p1 = pneg %p1338_p9 }
  0x24   : > { %p1346_p8 = pnand %p1345_p4, %p1339_p1 }
  0x26   : > { %1349 = shalt.err (!%p1346_p8)
}
  0x27   : > { %s1453_s8 = smov 256   ;;  %s1454_s9 = smov 16  }
  0x28   : > { %1269 = dma.hbm_to_vmem [thread:$0]  (!%p1530_p10), %s1935_s1, 512, %s135_s22, [#allocation3], %s1453_s8, %s1453_s8, %s1454_s9  }
  0x29   : > { %p67_p11 = scmp.eq.s32.totalorder %s66_s26, 0  ;;  %p76_p2 = scmp.ne.s32.totalorder %s1446_s14, %s1442_s13 }
  0x2a   : > { %p77_p1 = scmp.eq.s32.totalorder %s1450_s15, 0  ;;  %p1279_p4 = scmp.lt.s32.totalorder %s1450_s15, 6 }
  0x2b   : > { %s1561_s17 = scalar_select %p67_p11, %s1446_s14, %s69_s25  }
  0x2c   : > { %p78_p6 = por %p77_p1, %p76_p2  ;;  %p1945_p8 = scmp.eq.s32.totalorder %s1503_s16, 5 }
  0x2d   : > { %s148_s27 = sand.u32 1, %s1446_s14   ;;  %s1160_s28 = sshll.u32 %s1450_s15, 8 }
  0x2e   : > { %p1565_p12 = por %p1945_p8, %p76_p2  ;;  %s1084_s29 = sshll.u32 %s148_s27, 4 }
  0x2f   : > { %s1574_s4 = scalar_lea.hbm %s1936_s2, %s1160_s28  ;;  %s152_s22 = scalar_lea.vmem [#allocation5], %s1084_s29 }
  0x30   : > { %s159_s25 = sshll.u32 %s152_s22, 4  ;;  %p1576_p10 = pnand %p1279_p4, %p78_p6  ;;  %s1580_s25 = int_to_ptr.vmem [resolvable:$true] %s159_s25 }
  0x31   : > { %s1582_s5 = scalar_lea.sflag [#allocation6], %s148_s27  ;;  %s1350_s6 = scalar_lea.hbm %s1574_s4, 256 }
  0x32   : > { %p1351_p13 = scmp.ne.s32.totalorder %s1574_s4, %s1350_s6  ;;  %p1352_p0 = pneg %p1576_p10 }
  0x33   : > { %s1355_s9 = scalar_lea.hbm %s1936_s2, 1536  ;;  %p1356_p7 = scmp.lt.u32.totalorder %s1574_s4, %s1936_s2 }
  0x34   : > { %p1353_p3 = pnand %p1352_p0, %p1351_p13  ;;  %p1357_p9 = scmp.lt.u32.totalorder %s1355_s9, %s1350_s6 }
  0x35   : > { %p1359_p2 = scmp.lt.u32.totalorder %s1350_s6, %s1574_s4 }
  0x36   : > { %p1354_p5 = pneg %p1353_p3  ;;  %p1358_p11 = por %p1357_p9, %p1356_p7 }
  0x38   : > { %p1360_p1 = por %p1359_p2, %p1358_p11 }
  0x3a   : > { %p1361_p4 = pnand %p1360_p1, %p1354_p5 }
  0x3c   : > { %1364 = shalt.err (!%p1361_p4)
}
  0x3d   : > { %s1365_s27 = scalar_lea.vmem %s1580_s25, 256  ;;  %s1455_s28 = smov [#allocation5]  }
  0x3e   : > { %p1366_p6 = scmp.ne.s32.totalorder %s1580_s25, %s1365_s27  ;;  %s1370_s29 = sshll.u32 %s1455_s28, 4  ;;  %s1371_s29 = int_to_ptr.vmem [resolvable:$false] %s1370_s29 }
  0x3f   : > { %s1372_s23 = scalar_lea.vmem %s1371_s29, 512  ;;  %p1373_p3 = scmp.lt.s32.totalorder %s1580_s25, %s1371_s29 }
  0x40   : > { %p1368_p8 = pnand %p1366_p6, %p1352_p0  ;;  %p1374_p7 = scmp.lt.s32.totalorder %s1372_s23, %s1365_s27 }
  0x42   : > { %p1369_p13 = pneg %p1368_p8  ;;  %p1375_p9 = por %p1374_p7, %p1373_p3 }
  0x44   : > { %p1376_p11 = pnand %p1375_p9, %p1369_p13 }
  0x46   : > { %1379 = shalt.err (!%p1376_p11)
}
  0x47   : > { %s1456_s30 = smov 128   ;;  %s1457_s22 = smov 8  }
  0x48   : > { %1273 = dma.hbm_to_vmem [thread:$0]  (!%p1576_p10), %s1574_s4, 256, %s1580_s25, %s1582_s5, %s1456_s30, %s1456_s30, %s1457_s22  }
  0x49   : > { %p1948_p0 = scmp.ne.s32.totalorder %s1943_s20, 0 }
  0x4a   : > { %p1949_p5 = scmp.eq.s32.totalorder (!%p1948_p0), %s1503_s16, 0 }
  0x4b   : > { %171 = sbr.rel (%p1948_p0) target bundleno = 643 (0x283), region = 32 }
  0x52   : > { %1425 = dma.done.wait (%p1949_p5), [#allocation3], 512   ;;  %p1950_p2 = pmov %p1949_p5 }
  0x53   : > { %s1617_s6 = sand.u32 1, %s1442_s13   ;;  %p1951_p1 = scmp.ne.s32.totalorder %s1941_s18, 0 }
  0x54   : > { %1427 = vsyncadd (%p1950_p2), [#allocation3], 4294966784  ;;  %s1089_s7 = sshll.u32 %s1617_s6, 4  ;;  %s178_s8 = scalar_lea.sflag [#allocation6], %s1617_s6 }
  0x55   : > { %s181_s9 = scalar_lea.vmem [#allocation5], %s1089_s7 }
  0x56   : > { %1429 = dma.done.wait (%p1951_p1), %s178_s8, 256  }
  0x57   : > { %1431 = vsyncadd (%p1951_p1), %s178_s8, 4294967040  ;;  %vm238_vm0 = vcmask 130048   ;;  %v204_v0 = vld [vmem:[%s181_s9] sm:$0xff]  ;;  %v205_v1 = vld [vmem:[%s181_s9 + $0x8] sm:$0xff]  ;;  %v1458_v41 = vmov 0.0   ;;  %s1090_s22 = sshll.u32 %s1617_s6, 9 }
  0x58   : > { %v206_v2 = vld [vmem:[%s1934_s0] sm:$0xff]  ;;  %v1248_v3 = vpack.c.bf16 %v205_v1, %v204_v0  ;;  %v207_v4 = vld [vmem:[%s1934_s0 + $0x8] sm:$0xff]  ;;  %v208_v5 = vld [vmem:[%s1934_s0 + $0x10] sm:$0xff]  ;;  %772 = vmatprep.mubr.f32.mxu1 %v1458_v41  ;;  %s1818_s7 = scalar_lea.vmem [#allocation7], %s1090_s22  ;;  %s1161_s8 = sshll.u32 %s1503_s16, 13 }
  0x59   : > { %1200 = vmatprep.mubr.msk.f32.mxu0 %vm238_vm0, %v206_v2  ;;  %v209_v6 = vld [vmem:[%s1934_s0 + $0x18] sm:$0xff]  ;;  %v210_v7 = vld [vmem:[%s1934_s0 + $0x20] sm:$0xff]  ;;  %v561_v8 = vld [vmem:[#allocation2 + $0x8] sm:$0xff]  ;;  %s995_s9 = sshll.u32 %s1818_s7, 4  ;;  %s1887_s25 = scalar_lea.hbm %s1937_s3, %s1161_s8  ;;  %s1889_s9 = int_to_ptr.vmem [resolvable:$true] %s995_s9 }
  0x5a   : > { %1249 = vmatprep.subr.bf16.mxu0 %v1248_v3  ;;  %v563_v9 = vld [vmem:[#allocation2 + $0x18] sm:$0xff]  ;;  %v211_v10 = vld [vmem:[%s1934_s0 + $0x28] sm:$0xff]  ;;  %v560_v12 = vld [vmem:[#allocation2] sm:$0xff]  ;;  %s982_s26 = scalar_lea.sflag [#allocation4], %s1617_s6  ;;  %s1380_s16 = scalar_lea.vmem %s1889_s9, 8192 }
  0x5b   : > { %1251 = vmatpush3.bf16.msra.mxu0 %v1248_v3  ;;  %v1252_v11 = vpack.c.bf16 %v563_v9, %v561_v8  ;;  %v562_v13 = vld [vmem:[#allocation2 + $0x10] sm:$0xff]  ;;  %v213_v16 = vld [vmem:[%s1934_s0 + $0x38] sm:$0xff]  ;;  %v214_v17 = vld [vmem:[%s1934_s0 + $0x40] sm:$0xff]  ;;  %p1381_p10 = scmp.ne.s32.totalorder %s1889_s9, %s1380_s16  ;;  %s1459_s5 = smov [#allocation7]  }
  0x5c   : > { %v212_v14 = vld [vmem:[%s1934_s0 + $0x30] sm:$0xff]  ;;  %v1254_v15 = vpack.c.bf16 %v562_v13, %v560_v12  ;;  %v215_v18 = vld [vmem:[%s1934_s0 + $0x48] sm:$0xff]  ;;  %v217_v20 = vld [vmem:[%s1934_s0 + $0x58] sm:$0xff]  ;;  %s1384_s10 = sshll.u32 %s1459_s5, 4  ;;  %s1385_s10 = int_to_ptr.vmem [resolvable:$false] %s1384_s10 }
  0x5d   : > { %1253 = vmatprep.subr.bf16.mxu0 %v1252_v11  ;;  %1256 = vmatprep.subr.bf16.mxu1 %v1252_v11  ;;  %v216_v19 = vld [vmem:[%s1934_s0 + $0x50] sm:$0xff]  ;;  %v218_v21 = vld [vmem:[%s1934_s0 + $0x60] sm:$0xff]  ;;  %v219_v22 = vld [vmem:[%s1934_s0 + $0x68] sm:$0xff]  ;;  %p1382_p4 = pnand %p1381_p10, %p1565_p12  ;;  %s1386_s18 = scalar_lea.vmem %s1385_s10, 16384 }
  0x5e   : > { %1201 = vmatmul.mubr.msk.f32.vlgmr.msra.gmra.mrb[0].mxu0 %vm238_vm0, %v207_v4  ;;  %1257 = vmatpush1.bf16.msra.mxu1 %v1254_v15  ;;  %v220_v23 = vld [vmem:[%s1934_s0 + $0x70] sm:$0xff]  ;;  %v221_v24 = vld [vmem:[%s1934_s0 + $0x78] sm:$0xff]  ;;  %v222_v25 = vld [vmem:[%s1934_s0 + $0x80] sm:$0xff]  ;;  %p1387_p8 = scmp.lt.s32.totalorder %s1889_s9, %s1385_s10  ;;  %p1388_p13 = scmp.lt.s32.totalorder %s1386_s18, %s1380_s16 }
  0x5f   : > { %1203 = vmatprep.mubr.msk.f32.mxu0 %vm238_vm0, %v208_v5  ;;  %1255 = vmatpush1.bf16.msra.mxu0 %v1254_v15  ;;  %v223_v26 = vld [vmem:[%s1934_s0 + $0x88] sm:$0xff]  ;;  %v224_v27 = vld [vmem:[%s1934_s0 + $0x90] sm:$0xff]  ;;  %v225_v28 = vld [vmem:[%s1934_s0 + $0x98] sm:$0xff]  ;;  %p1383_p6 = pneg %p1382_p4 }
  0x60   : > { %v226_v29 = vld [vmem:[%s1934_s0 + $0xa0] sm:$0xff]  ;;  %v227_v30 = vld [vmem:[%s1934_s0 + $0xa8] sm:$0xff]  ;;  %v228_v31 = vld [vmem:[%s1934_s0 + $0xb0] sm:$0xff]  ;;  %p1389_p3 = por %p1388_p13, %p1387_p8 }
  0x61   : > { %v229_v32 = vld [vmem:[%s1934_s0 + $0xb8] sm:$0xff]  ;;  %v230_v33 = vld [vmem:[%s1934_s0 + $0xc0] sm:$0xff]  ;;  %v231_v34 = vld [vmem:[%s1934_s0 + $0xc8] sm:$0xff] }
  0x62   : > { %1204 = vmatmul.mubr.msk.f32.gmra.mrb[2].mxu0 %vm238_vm0, %v209_v6  ;;  %v232_v35 = vld [vmem:[%s1934_s0 + $0xd0] sm:$0xff]  ;;  %v233_v36 = vld [vmem:[%s1934_s0 + $0xd8] sm:$0xff]  ;;  %v234_v37 = vld [vmem:[%s1934_s0 + $0xe0] sm:$0xff]  ;;  %p1390_p7 = pnand %p1389_p3, %p1383_p6 }
  0x63   : > { %1206 = vmatprep.mubr.msk.f32.mxu0 %vm238_vm0, %v210_v7  ;;  %v235_v38 = vld [vmem:[%s1934_s0 + $0xe8] sm:$0xff]  ;;  %v236_v39 = vld [vmem:[%s1934_s0 + $0xf0] sm:$0xff]  ;;  %v237_v40 = vld [vmem:[%s1934_s0 + $0xf8] sm:$0xff] }
  0x66   : > { %1207 = vmatmul.mubr.msk.f32.gmra.mrb[4].mxu0 %vm238_vm0, %v211_v10 }
  0x67   : > { %1209 = vmatprep.mubr.msk.f32.mxu0 %vm238_vm0, %v212_v14 }
  0x6a   : > { %1210 = vmatmul.mubr.msk.f32.gmra.mrb[6].mxu0 %vm238_vm0, %v213_v16 }
  0x6b   : > { %1212 = vmatprep.mubr.msk.f32.mxu0 %vm238_vm0, %v214_v17 }
  0x6e   : > { %1213 = vmatmul.mubr.msk.f32.gmra.mrb[8].mxu0 %vm238_vm0, %v215_v18 }
  0x6f   : > { %1215 = vmatprep.mubr.msk.f32.mxu0 %vm238_vm0, %v216_v19 }
  0x72   : > { %1216 = vmatmul.mubr.msk.f32.gmra.mrb[10].mxu0 %vm238_vm0, %v217_v20 }
  0x73   : > { %1218 = vmatprep.mubr.msk.f32.mxu0 %vm238_vm0, %v218_v21 }
  0x76   : > { %1219 = vmatmul.mubr.msk.f32.gmra.mrb[12].mxu0 %vm238_vm0, %v219_v22 }
  0x77   : > { %1221 = vmatprep.mubr.msk.f32.mxu0 %vm238_vm0, %v220_v23 }
  0x7a   : > { %1222 = vmatmul.mubr.msk.f32.gmra.mrb[14].mxu0 %vm238_vm0, %v221_v24 }
  0x7b   : > { %1224 = vmatprep.mubr.msk.f32.mxu0 %vm238_vm0, %v222_v25 }
  0x7e   : > { %1225 = vmatmul.mubr.msk.f32.gmra.mrb[16].mxu0 %vm238_vm0, %v223_v26 }
  0x7f   : > { %1227 = vmatprep.mubr.msk.f32.mxu0 %vm238_vm0, %v224_v27 }
  0x82   : > { %1228 = vmatmul.mubr.msk.f32.gmra.mrb[18].mxu0 %vm238_vm0, %v225_v28 }
  0x83   : > { %1230 = vmatprep.mubr.msk.f32.mxu0 %vm238_vm0, %v226_v29 }
  0x86   : > { %1231 = vmatmul.mubr.msk.f32.gmra.mrb[20].mxu0 %vm238_vm0, %v227_v30 }
  0x87   : > { %1233 = vmatprep.mubr.msk.f32.mxu0 %vm238_vm0, %v228_v31 }
  0x8a   : > { %1234 = vmatmul.mubr.msk.f32.gmra.mrb[22].mxu0 %vm238_vm0, %v229_v32 }
  0x8b   : > { %1236 = vmatprep.mubr.msk.f32.mxu0 %vm238_vm0, %v230_v33 }
  0x8e   : > { %1237 = vmatmul.mubr.msk.f32.gmra.mrb[24].mxu0 %vm238_vm0, %v231_v34 }
  0x8f   : > { %1239 = vmatprep.mubr.msk.f32.mxu0 %vm238_vm0, %v232_v35 }
  0x92   : > { %1240 = vmatmul.mubr.msk.f32.gmra.mrb[26].mxu0 %vm238_vm0, %v233_v36 }
  0x93   : > { %1242 = vmatprep.mubr.msk.f32.mxu0 %vm238_vm0, %v234_v37 }
  0x96   : > { %1243 = vmatmul.mubr.msk.f32.gmra.mrb[28].mxu0 %vm238_vm0, %v235_v38 }
  0x97   : > { %1245 = vmatprep.mubr.msk.f32.mxu0 %vm238_vm0, %v236_v39 }
  0x9a   : > { %1246 = vmatmul.mubr.msk.f32.gmra.mrb[30].mxu0 %vm238_vm0, %v237_v40 }
  0x9b   : > { %724 = vmatprep.mubr.f32.mxu0 %v1458_v41 }
 0x131   : > { %v1202_v42 = vpop.f32.mrb[0].mxu0 }
 0x132   : > { %v401_v43 = vpop.f32.mrb[1].mxu0 }
 0x133   : > { %1123 = vmatmul.mubr.msk.f32.vlgmr.msra.gmra.mrb[32].mxu0 %vm238_vm0, %v401_v43 }
 0x134   : > { %730 = vmatprep.mubr.f32.mxu0 %v1458_v41 }
 0x135   : > { %v1205_v44 = vpop.f32.mrb[2].mxu0 }
 0x136   : > { %v411_v45 = vpop.f32.mrb[3].mxu0 }
 0x137   : > { %1124 = vmatmul.mubr.msk.f32.gmra.mrb[34].mxu0 %vm238_vm0, %v1202_v42 }
 0x138   : > { %736 = vmatprep.mubr.f32.mxu0 %v1458_v41 }
 0x139   : > { %v1208_v46 = vpop.f32.mrb[4].mxu0 }
 0x13a   : > { %v421_v47 = vpop.f32.mrb[5].mxu0 }
 0x13b   : > { %1125 = vmatmul.mubr.msk.f32.gmra.mrb[36].mxu0 %vm238_vm0, %v411_v45 }
 0x13c   : > { %742 = vmatprep.mubr.f32.mxu0 %v1458_v41 }
 0x13d   : > { %v1211_v48 = vpop.f32.mrb[6].mxu0 }
 0x13e   : > { %v431_v49 = vpop.f32.mrb[7].mxu0 }
 0x13f   : > { %1126 = vmatmul.mubr.msk.f32.gmra.mrb[38].mxu0 %vm238_vm0, %v1205_v44 }
 0x140   : > { %748 = vmatprep.mubr.f32.mxu0 %v1458_v41 }
 0x141   : > { %v1214_v50 = vpop.f32.mrb[8].mxu0 }
 0x142   : > { %v441_v51 = vpop.f32.mrb[9].mxu0 }
 0x143   : > { %1127 = vmatmul.mubr.msk.f32.gmra.mrb[40].mxu0 %vm238_vm0, %v421_v47  ;;  %1131 = vmatmul.mubr.msk.f32.vlgmr.msra.gmra.mrb[0].mxu1 %vm238_vm0, %v441_v51 }
 0x144   : > { %754 = vmatprep.mubr.f32.mxu0 %v1458_v41  ;;  %778 = vmatprep.mubr.f32.mxu1 %v1458_v41 }
 0x145   : > { %v1217_v52 = vpop.f32.mrb[10].mxu0 }
 0x146   : > { %v451_v53 = vpop.f32.mrb[11].mxu0 }
 0x147   : > { %1128 = vmatmul.mubr.msk.f32.gmra.mrb[42].mxu0 %vm238_vm0, %v1208_v46  ;;  %1132 = vmatmul.mubr.msk.f32.gmra.mrb[2].mxu1 %vm238_vm0, %v1214_v50 }
 0x148   : > { %760 = vmatprep.mubr.f32.mxu0 %v1458_v41  ;;  %784 = vmatprep.mubr.f32.mxu1 %v1458_v41 }
 0x149   : > { %v1220_v54 = vpop.f32.mrb[12].mxu0 }
 0x14a   : > { %v461_v55 = vpop.f32.mrb[13].mxu0 }
 0x14b   : > { %1129 = vmatmul.mubr.msk.f32.gmra.mrb[44].mxu0 %vm238_vm0, %v431_v49  ;;  %1133 = vmatmul.mubr.msk.f32.gmra.mrb[4].mxu1 %vm238_vm0, %v451_v53 }
 0x14c   : > { %766 = vmatprep.mubr.f32.mxu0 %v1458_v41  ;;  %790 = vmatprep.mubr.f32.mxu1 %v1458_v41 }
 0x14d   : > { %v1223_v56 = vpop.f32.mrb[14].mxu0 }
 0x14e   : > { %v471_v57 = vpop.f32.mrb[15].mxu0 }
 0x14f   : > { %1130 = vmatmul.mubr.msk.f32.gmra.mrb[46].mxu0 %vm238_vm0, %v1211_v48  ;;  %1134 = vmatmul.mubr.msk.f32.gmra.mrb[6].mxu1 %vm238_vm0, %v1217_v52 }
 0x150   : > { %796 = vmatprep.mubr.f32.mxu1 %v1458_v41 }
 0x151   : > { %v1226_v58 = vpop.f32.mrb[16].mxu0 }
 0x152   : > { %v481_v59 = vpop.f32.mrb[17].mxu0 }
 0x153   : > { %1135 = vmatmul.mubr.msk.f32.gmra.mrb[8].mxu1 %vm238_vm0, %v461_v55 }
 0x154   : > { %802 = vmatprep.mubr.f32.mxu1 %v1458_v41 }
 0x155   : > { %v1229_v60 = vpop.f32.mrb[18].mxu0 }
 0x156   : > { %v491_v61 = vpop.f32.mrb[19].mxu0 }
 0x157   : > { %1136 = vmatmul.mubr.msk.f32.gmra.mrb[10].mxu1 %vm238_vm0, %v1220_v54 }
 0x158   : > { %808 = vmatprep.mubr.f32.mxu1 %v1458_v41 }
 0x159   : > { %v1232_v62 = vpop.f32.mrb[20].mxu0 }
 0x15a   : > { %v501_v63 = vpop.f32.mrb[21].mxu0 }
 0x15b   : > { %1137 = vmatmul.mubr.msk.f32.gmra.mrb[12].mxu1 %vm238_vm0, %v471_v57 }
 0x15c   : > { %814 = vmatprep.mubr.f32.mxu1 %v1458_v41 }
 0x15d   : > { %v1235_v0 = vpop.f32.mrb[22].mxu0 }
 0x15e   : > { %v511_v1 = vpop.f32.mrb[23].mxu0 }
 0x15f   : > { %1138 = vmatmul.mubr.msk.f32.gmra.mrb[14].mxu1 %vm238_vm0, %v1223_v56 }
 0x160   : > { %820 = vmatprep.mubr.f32.mxu1 %v1458_v41 }
 0x161   : > { %v1238_v2 = vpop.f32.mrb[24].mxu0 }
 0x162   : > { %v521_v3 = vpop.f32.mrb[25].mxu0 }
 0x163   : > { %1139 = vmatmul.mubr.msk.f32.gmra.mrb[16].mxu1 %vm238_vm0, %v481_v59 }
 0x164   : > { %826 = vmatprep.mubr.f32.mxu1 %v1458_v41 }
 0x165   : > { %v1241_v4 = vpop.f32.mrb[26].mxu0 }
 0x166   : > { %v531_v5 = vpop.f32.mrb[27].mxu0 }
 0x167   : > { %1140 = vmatmul.mubr.msk.f32.gmra.mrb[18].mxu1 %vm238_vm0, %v1226_v58 }
 0x168   : > { %832 = vmatprep.mubr.f32.mxu1 %v1458_v41 }
 0x169   : > { %v1244_v6 = vpop.f32.mrb[28].mxu0 }
 0x16a   : > { %v541_v7 = vpop.f32.mrb[29].mxu0 }
 0x16b   : > { %1141 = vmatmul.mubr.msk.f32.gmra.mrb[20].mxu1 %vm238_vm0, %v491_v61 }
 0x16c   : > { %838 = vmatprep.mubr.f32.mxu1 %v1458_v41 }
 0x16d   : > { %v1247_v8 = vpop.f32.mrb[30].mxu0 }
 0x16e   : > { %v551_v9 = vpop.f32.mrb[31].mxu0 }
 0x16f   : > { %1142 = vmatmul.mubr.msk.f32.gmra.mrb[22].mxu1 %vm238_vm0, %v1229_v60 }
 0x170   : > { %844 = vmatprep.mubr.f32.mxu1 %v1458_v41 }
 0x173   : > { %1143 = vmatmul.mubr.msk.f32.gmra.mrb[24].mxu1 %vm238_vm0, %v501_v63 }
 0x174   : > { %850 = vmatprep.mubr.f32.mxu1 %v1458_v41 }
 0x177   : > { %1144 = vmatmul.mubr.msk.f32.gmra.mrb[26].mxu1 %vm238_vm0, %v1232_v62 }
 0x178   : > { %856 = vmatprep.mubr.f32.mxu1 %v1458_v41 }
 0x17b   : > { %1145 = vmatmul.mubr.msk.f32.gmra.mrb[28].mxu1 %vm238_vm0, %v511_v1 }
 0x17c   : > { %862 = vmatprep.mubr.f32.mxu1 %v1458_v41 }
 0x17f   : > { %1146 = vmatmul.mubr.msk.f32.gmra.mrb[30].mxu1 %vm238_vm0, %v1235_v0 }
 0x180   : > { %868 = vmatprep.mubr.f32.mxu1 %v1458_v41 }
 0x183   : > { %1147 = vmatmul.mubr.msk.f32.gmra.mrb[32].mxu1 %vm238_vm0, %v521_v3 }
 0x184   : > { %874 = vmatprep.mubr.f32.mxu1 %v1458_v41 }
 0x187   : > { %1148 = vmatmul.mubr.msk.f32.gmra.mrb[34].mxu1 %vm238_vm0, %v1238_v2 }
 0x188   : > { %880 = vmatprep.mubr.f32.mxu1 %v1458_v41 }
 0x18b   : > { %1149 = vmatmul.mubr.msk.f32.gmra.mrb[36].mxu1 %vm238_vm0, %v531_v5 }
 0x18c   : > { %886 = vmatprep.mubr.f32.mxu1 %v1458_v41 }
 0x18f   : > { %1150 = vmatmul.mubr.msk.f32.gmra.mrb[38].mxu1 %vm238_vm0, %v1241_v4 }
 0x190   : > { %892 = vmatprep.mubr.f32.mxu1 %v1458_v41 }
 0x193   : > { %1151 = vmatmul.mubr.msk.f32.gmra.mrb[40].mxu1 %vm238_vm0, %v541_v7 }
 0x194   : > { %898 = vmatprep.mubr.f32.mxu1 %v1458_v41 }
 0x197   : > { %1152 = vmatmul.mubr.msk.f32.gmra.mrb[42].mxu1 %vm238_vm0, %v1244_v6 }
 0x198   : > { %904 = vmatprep.mubr.f32.mxu1 %v1458_v41 }
 0x19b   : > { %1153 = vmatmul.mubr.msk.f32.gmra.mrb[44].mxu1 %vm238_vm0, %v551_v9 }
 0x19c   : > { %910 = vmatprep.mubr.f32.mxu1 %v1458_v41 }
 0x19f   : > { %1154 = vmatmul.mubr.msk.f32.gmra.mrb[46].mxu1 %vm238_vm0, %v1247_v8 }
 0x206   : > { %v726_v10 = vpop.f32.mrb[32].mxu0 }
 0x207   : > { %917 = vst [vmem:[%s1818_s7] sm:$0xff] %v726_v10  ;;  %v728_v11 = vpop.f32.mrb[33].mxu0 }
 0x208   : > { %918 = vst [vmem:[%s1818_s7 + $0x8] sm:$0xff] %v728_v11 }
 0x20a   : > { %v732_v12 = vpop.f32.mrb[34].mxu0 }
 0x20b   : > { %919 = vst [vmem:[%s1818_s7 + $0x10] sm:$0xff] %v732_v12  ;;  %v734_v13 = vpop.f32.mrb[35].mxu0 }
 0x20c   : > { %920 = vst [vmem:[%s1818_s7 + $0x18] sm:$0xff] %v734_v13 }
 0x20e   : > { %v738_v14 = vpop.f32.mrb[36].mxu0 }
 0x20f   : > { %921 = vst [vmem:[%s1818_s7 + $0x20] sm:$0xff] %v738_v14  ;;  %v740_v15 = vpop.f32.mrb[37].mxu0 }
 0x210   : > { %922 = vst [vmem:[%s1818_s7 + $0x28] sm:$0xff] %v740_v15 }
 0x212   : > { %v744_v16 = vpop.f32.mrb[38].mxu0 }
 0x213   : > { %923 = vst [vmem:[%s1818_s7 + $0x30] sm:$0xff] %v744_v16  ;;  %v746_v17 = vpop.f32.mrb[39].mxu0 }
 0x214   : > { %924 = vst [vmem:[%s1818_s7 + $0x38] sm:$0xff] %v746_v17 }
 0x216   : > { %v750_v18 = vpop.f32.mrb[40].mxu0  ;;  %v774_v19 = vpop.f32.mrb[0].mxu1 }
 0x217   : > { %925 = vst [vmem:[%s1818_s7 + $0x40] sm:$0xff] %v750_v18  ;;  %933 = vst [vmem:[%s1818_s7 + $0x80] sm:$0xff] %v774_v19  ;;  %v752_v20 = vpop.f32.mrb[41].mxu0  ;;  %v776_v21 = vpop.f32.mrb[1].mxu1 }
 0x218   : > { %926 = vst [vmem:[%s1818_s7 + $0x48] sm:$0xff] %v752_v20  ;;  %934 = vst [vmem:[%s1818_s7 + $0x88] sm:$0xff] %v776_v21 }
 0x21a   : > { %v756_v22 = vpop.f32.mrb[42].mxu0  ;;  %v780_v23 = vpop.f32.mrb[2].mxu1 }
 0x21b   : > { %927 = vst [vmem:[%s1818_s7 + $0x50] sm:$0xff] %v756_v22  ;;  %935 = vst [vmem:[%s1818_s7 + $0x90] sm:$0xff] %v780_v23  ;;  %v758_v24 = vpop.f32.mrb[43].mxu0  ;;  %v782_v25 = vpop.f32.mrb[3].mxu1 }
 0x21c   : > { %928 = vst [vmem:[%s1818_s7 + $0x58] sm:$0xff] %v758_v24  ;;  %936 = vst [vmem:[%s1818_s7 + $0x98] sm:$0xff] %v782_v25 }
 0x21e   : > { %v762_v26 = vpop.f32.mrb[44].mxu0  ;;  %v786_v27 = vpop.f32.mrb[4].mxu1 }
 0x21f   : > { %929 = vst [vmem:[%s1818_s7 + $0x60] sm:$0xff] %v762_v26  ;;  %937 = vst [vmem:[%s1818_s7 + $0xa0] sm:$0xff] %v786_v27  ;;  %v764_v28 = vpop.f32.mrb[45].mxu0  ;;  %v788_v29 = vpop.f32.mrb[5].mxu1 }
 0x220   : > { %930 = vst [vmem:[%s1818_s7 + $0x68] sm:$0xff] %v764_v28  ;;  %938 = vst [vmem:[%s1818_s7 + $0xa8] sm:$0xff] %v788_v29 }
 0x222   : > { %v768_v30 = vpop.f32.mrb[46].mxu0  ;;  %v792_v31 = vpop.f32.mrb[6].mxu1 }
 0x223   : > { %931 = vst [vmem:[%s1818_s7 + $0x70] sm:$0xff] %v768_v30  ;;  %939 = vst [vmem:[%s1818_s7 + $0xb0] sm:$0xff] %v792_v31  ;;  %v770_v32 = vpop.f32.mrb[47].mxu0  ;;  %v794_v33 = vpop.f32.mrb[7].mxu1 }
 0x224   : > { %932 = vst [vmem:[%s1818_s7 + $0x78] sm:$0xff] %v770_v32  ;;  %940 = vst [vmem:[%s1818_s7 + $0xb8] sm:$0xff] %v794_v33 }
 0x226   : > { %v798_v34 = vpop.f32.mrb[8].mxu1 }
 0x227   : > { %941 = vst [vmem:[%s1818_s7 + $0xc0] sm:$0xff] %v798_v34  ;;  %v800_v35 = vpop.f32.mrb[9].mxu1 }
 0x228   : > { %942 = vst [vmem:[%s1818_s7 + $0xc8] sm:$0xff] %v800_v35 }
 0x22a   : > { %v804_v36 = vpop.f32.mrb[10].mxu1 }
 0x22b   : > { %943 = vst [vmem:[%s1818_s7 + $0xd0] sm:$0xff] %v804_v36  ;;  %v806_v37 = vpop.f32.mrb[11].mxu1 }
 0x22c   : > { %944 = vst [vmem:[%s1818_s7 + $0xd8] sm:$0xff] %v806_v37 }
 0x22e   : > { %v810_v38 = vpop.f32.mrb[12].mxu1 }
 0x22f   : > { %945 = vst [vmem:[%s1818_s7 + $0xe0] sm:$0xff] %v810_v38  ;;  %v812_v39 = vpop.f32.mrb[13].mxu1 }
 0x230   : > { %946 = vst [vmem:[%s1818_s7 + $0xe8] sm:$0xff] %v812_v39 }
 0x232   : > { %v816_v40 = vpop.f32.mrb[14].mxu1 }
 0x233   : > { %947 = vst [vmem:[%s1818_s7 + $0xf0] sm:$0xff] %v816_v40  ;;  %v818_v41 = vpop.f32.mrb[15].mxu1 }
 0x234   : > { %948 = vst [vmem:[%s1818_s7 + $0xf8] sm:$0xff] %v818_v41 }
 0x236   : > { %v822_v42 = vpop.f32.mrb[16].mxu1 }
 0x237   : > { %949 = vst [vmem:[%s1818_s7 + $0x100] sm:$0xff] %v822_v42  ;;  %v824_v43 = vpop.f32.mrb[17].mxu1 }
 0x238   : > { %950 = vst [vmem:[%s1818_s7 + $0x108] sm:$0xff] %v824_v43 }
 0x23a   : > { %v828_v44 = vpop.f32.mrb[18].mxu1 }
 0x23b   : > { %951 = vst [vmem:[%s1818_s7 + $0x110] sm:$0xff] %v828_v44  ;;  %v830_v45 = vpop.f32.mrb[19].mxu1 }
 0x23c   : > { %952 = vst [vmem:[%s1818_s7 + $0x118] sm:$0xff] %v830_v45 }
 0x23e   : > { %v834_v46 = vpop.f32.mrb[20].mxu1 }
 0x23f   : > { %953 = vst [vmem:[%s1818_s7 + $0x120] sm:$0xff] %v834_v46  ;;  %v836_v47 = vpop.f32.mrb[21].mxu1 }
 0x240   : > { %954 = vst [vmem:[%s1818_s7 + $0x128] sm:$0xff] %v836_v47 }
 0x242   : > { %v840_v48 = vpop.f32.mrb[22].mxu1 }
 0x243   : > { %955 = vst [vmem:[%s1818_s7 + $0x130] sm:$0xff] %v840_v48  ;;  %v842_v49 = vpop.f32.mrb[23].mxu1 }
 0x244   : > { %956 = vst [vmem:[%s1818_s7 + $0x138] sm:$0xff] %v842_v49 }
 0x246   : > { %v846_v50 = vpop.f32.mrb[24].mxu1 }
 0x247   : > { %957 = vst [vmem:[%s1818_s7 + $0x140] sm:$0xff] %v846_v50  ;;  %v848_v51 = vpop.f32.mrb[25].mxu1 }
 0x248   : > { %958 = vst [vmem:[%s1818_s7 + $0x148] sm:$0xff] %v848_v51 }
 0x24a   : > { %v852_v52 = vpop.f32.mrb[26].mxu1 }
 0x24b   : > { %959 = vst [vmem:[%s1818_s7 + $0x150] sm:$0xff] %v852_v52  ;;  %v854_v53 = vpop.f32.mrb[27].mxu1 }
 0x24c   : > { %960 = vst [vmem:[%s1818_s7 + $0x158] sm:$0xff] %v854_v53 }
 0x24e   : > { %v858_v54 = vpop.f32.mrb[28].mxu1 }
 0x24f   : > { %961 = vst [vmem:[%s1818_s7 + $0x160] sm:$0xff] %v858_v54  ;;  %v860_v55 = vpop.f32.mrb[29].mxu1 }
 0x250   : > { %962 = vst [vmem:[%s1818_s7 + $0x168] sm:$0xff] %v860_v55 }
 0x252   : > { %v864_v56 = vpop.f32.mrb[30].mxu1 }
 0x253   : > { %963 = vst [vmem:[%s1818_s7 + $0x170] sm:$0xff] %v864_v56  ;;  %v866_v57 = vpop.f32.mrb[31].mxu1 }
 0x254   : > { %964 = vst [vmem:[%s1818_s7 + $0x178] sm:$0xff] %v866_v57 }
 0x256   : > { %v870_v58 = vpop.f32.mrb[32].mxu1 }
 0x257   : > { %965 = vst [vmem:[%s1818_s7 + $0x180] sm:$0xff] %v870_v58  ;;  %v872_v59 = vpop.f32.mrb[33].mxu1 }
 0x258   : > { %966 = vst [vmem:[%s1818_s7 + $0x188] sm:$0xff] %v872_v59 }
 0x25a   : > { %v876_v60 = vpop.f32.mrb[34].mxu1 }
 0x25b   : > { %967 = vst [vmem:[%s1818_s7 + $0x190] sm:$0xff] %v876_v60  ;;  %v878_v61 = vpop.f32.mrb[35].mxu1 }
 0x25c   : > { %968 = vst [vmem:[%s1818_s7 + $0x198] sm:$0xff] %v878_v61 }
 0x25e   : > { %v882_v62 = vpop.f32.mrb[36].mxu1 }
 0x25f   : > { %969 = vst [vmem:[%s1818_s7 + $0x1a0] sm:$0xff] %v882_v62  ;;  %v884_v63 = vpop.f32.mrb[37].mxu1 }
 0x260   : > { %970 = vst [vmem:[%s1818_s7 + $0x1a8] sm:$0xff] %v884_v63 }
 0x262   : > { %v888_v0 = vpop.f32.mrb[38].mxu1 }
 0x263   : > { %971 = vst [vmem:[%s1818_s7 + $0x1b0] sm:$0xff] %v888_v0  ;;  %v890_v1 = vpop.f32.mrb[39].mxu1 }
 0x264   : > { %972 = vst [vmem:[%s1818_s7 + $0x1b8] sm:$0xff] %v890_v1 }
 0x266   : > { %v894_v2 = vpop.f32.mrb[40].mxu1 }
 0x267   : > { %973 = vst [vmem:[%s1818_s7 + $0x1c0] sm:$0xff] %v894_v2  ;;  %v896_v3 = vpop.f32.mrb[41].mxu1 }
 0x268   : > { %974 = vst [vmem:[%s1818_s7 + $0x1c8] sm:$0xff] %v896_v3 }
 0x26a   : > { %v900_v4 = vpop.f32.mrb[42].mxu1 }
 0x26b   : > { %975 = vst [vmem:[%s1818_s7 + $0x1d0] sm:$0xff] %v900_v4  ;;  %v902_v5 = vpop.f32.mrb[43].mxu1 }
 0x26c   : > { %976 = vst [vmem:[%s1818_s7 + $0x1d8] sm:$0xff] %v902_v5 }
 0x26e   : > { %v906_v6 = vpop.f32.mrb[44].mxu1 }
 0x26f   : > { %977 = vst [vmem:[%s1818_s7 + $0x1e0] sm:$0xff] %v906_v6  ;;  %v908_v7 = vpop.f32.mrb[45].mxu1 }
 0x270   : > { %978 = vst [vmem:[%s1818_s7 + $0x1e8] sm:$0xff] %v908_v7 }
 0x272   : > { %v912_v8 = vpop.f32.mrb[46].mxu1 }
 0x273   : > { %979 = vst [vmem:[%s1818_s7 + $0x1f0] sm:$0xff] %v912_v8  ;;  %v914_v9 = vpop.f32.mrb[47].mxu1 }
 0x274   : > { %980 = vst [vmem:[%s1818_s7 + $0x1f8] sm:$0xff] %v914_v9 }
 0x275   : > { %1393 = shalt.err (!%p1390_p7)
}
 0x276   : > { %s1394_s11 = scalar_lea.hbm %s1887_s25, 8192  ;;  %s1398_s29 = scalar_lea.hbm %s1937_s3, 49152 }
 0x277   : > { %p1395_p9 = scmp.ne.s32.totalorder %s1887_s25, %s1394_s11  ;;  %p1399_p5 = scmp.lt.u32.totalorder %s1887_s25, %s1937_s3 }
 0x278   : > { %p1400_p2 = scmp.lt.u32.totalorder %s1398_s29, %s1394_s11  ;;  %p1402_p10 = scmp.lt.u32.totalorder %s1394_s11, %s1887_s25 }
 0x279   : > { %p1396_p11 = pnand %p1395_p9, %p1565_p12 }
 0x27a   : > { %p1401_p1 = por %p1400_p2, %p1399_p5 }
 0x27b   : > { %p1397_p0 = pneg %p1396_p11 }
 0x27c   : > { %p1403_p4 = por %p1402_p10, %p1401_p1 }
 0x27e   : > { %p1404_p6 = pnand %p1403_p4, %p1397_p0 }
 0x280   : > { %1407 = shalt.err (!%p1404_p6)
}
 0x281   : > { %s1460_s22 = smov 256   ;;  %s1461_s7 = smov 16  }
 0x282   : > { %1264 = dma.vmem_to_hbm [thread:$0]  (%p1565_p12), %s1889_s9, 8192, %s1887_s25, %s982_s26, %s1460_s22, %s1460_s22, %s1461_s7  }
 0x283 PF: > { %p1281_p8 = scmp.ge.s32.totalorder %s1450_s15, 2  ;;  %s1010_s8 = sand.u32 1, %s1438_s12  }
 0x284   : > { %p1952_p13 = scmp.ne.s32.totalorder %s1942_s19, 0  ;;  %s1011_s20 = scalar_lea.sflag [#allocation4], %s1010_s8 }
 0x286   : > { %p1275_p3 = pnand %p1281_p8, %p1952_p13 }
 0x288   : > { %1433 = dma.done.wait (!%p1275_p3), %s1011_s20, 8192  }
 0x289   : > { %1435 = vsyncadd (!%p1275_p3), %s1011_s20, 4294959104  ;;  %p17_p7 = scmp.ge.s32.totalorder %s1535_s24, 8   ;;  %s1953_s12 = smov %s1442_s13 }
 0x28a   : > { %s1954_s13 = smov %s1446_s14  ;;  %s1955_s14 = smov %s1561_s17 }
 0x28b   : > { %s1956_s15 = smov %s1535_s24  ;;  %19 = sbr.rel (!%p17_p7) target bundleno = 6 (0x6), region = 82 }
 0x292   :  { %1016 = vsyncpa [#allocation3], 1 }
 0x293   :  { %1018 = vsyncpa [#allocation3 + $0x1], 1 }
 0x294   :  { %1019 = vsyncpa [#allocation6], 1 }
 0x295   :  { %1021 = vsyncpa [#allocation6 + $0x1], 1 }
 0x296   :  { %1022 = vsyncpa [#allocation4], 1 }
 0x297   :  { %1024 = vsyncpa [#allocation4 + $0x1], 1 }

</bundles_post_ra>
